<compile_context>
chip_gen: v5e
topology: v5e:2x2
jax: 0.10.0
libtpu: 0.0.40
codegen_flags: <defaults>
</compile_context>

<pallas_src>
import numpy as np

import jax
import jax.numpy as jnp
from jax import lax
from jax.experimental import pallas as pl
from jax.experimental.pallas import tpu as pltpu

# ----------------------------- model dims -----------------------------------
N, INPLANES, H, W = 2, 16, 16, 16        # NCHW input (PyTorch convention)
PLANES = 4
EXPANSION = 4
COUT = PLANES * EXPANSION                # 16 == INPLANES -> identity residual
KH = KW = 3
PL1 = PLANES + 1                         # conv1/conv2 channels + carried constant
EPS = 1e-5

ROWS_PAD = (H + 2) * N                   # 36   rows of the padded activation
LANES_PAD = (W + 2) * (INPLANES + 1)     # 306  lanes (pw-major, channel+indicator)
ROWS_OUT = N * H                         # 32
LANES_OUT = W * COUT                     # 256  lane-dense output slab
H1_LANES = (W + 2) * PL1                 # 90
H2_LANES = W * PL1                       # 80

assert INPLANES == PLANES * EXPANSION, "identity residual requires inplanes == planes*expansion"


# ------------------------- Pallas kernel: fused block ------------------------
def bottleneck_kernel(xpad_ref, xres_ref, w1_ref, b_ref, w3_ref, out_ref):
    # xpad_ref: (36, 306)  rows = ph*N + n, lanes = pw*(CIN+1) + c   (padded + indicator)
    # xres_ref: (32, 256)  rows = h*N + n,  lanes = w*COUT + c       (identity residual)
    # w1_ref  : (306, 90)  per-pw block-diag conv1 weight, BN1 folded (bias/halo-mask
    #                      ride the indicator channel; extra column carries a constant 1)
    # b_ref   : (3, 90, 80) banded conv2 lane-block weight, one per kh, BN2 folded
    # w3_ref  : (80, 256)  per-w block-diag conv3 weight, BN3 folded
    #
    # conv1 + bn1 + relu, once per padded pixel (halo rows/cols come out exactly 0,
    # matching a zero-padded relu(bn1(conv1(x)))).
    h1 = jnp.maximum(
        jnp.dot(xpad_ref[...], w1_ref[...], preferred_element_type=jnp.float32), 0.0)  # (36, 90)

    # conv2 3x3 + bn2 + relu: three row-shifted views of h1 (kh = 0,1,2); the row
    # stride of N keeps every shift inside its own image.
    h2 = jnp.zeros((ROWS_OUT, H2_LANES), jnp.float32)
    for kh in range(KH):
        h2 += jnp.dot(h1[N * kh:N * kh + ROWS_OUT, :], b_ref[kh],
                      preferred_element_type=jnp.float32)                               # (32, 80)
    h2 = jnp.maximum(h2, 0.0)

    # conv3 + bn3 (shift via the carried constant column) + residual + relu.
    h3 = jnp.dot(h2, w3_ref[...], preferred_element_type=jnp.float32)                   # (32, 256)
    out_ref[...] = jnp.maximum(h3 + xres_ref[...], 0.0)


# ------------------- one-time weight preparation (hoisted) -------------------
def prepare_bottleneck(params):
    """Fold BN (eval mode) into the conv weights and build the lane-blocked
    matrices the kernel consumes.  Runs ONCE, outside the per-call path."""
    p = {k: np.asarray(v, np.float32) for k, v in params.items()}

    def bn_fold(g, b, m, v):
        s = g / np.sqrt(v + EPS)
        return s, b - m * s

    s1, t1 = bn_fold(p["bn1_g"], p["bn1_b"], p["bn1_m"], p["bn1_v"])
    s2, t2 = bn_fold(p["bn2_g"], p["bn2_b"], p["bn2_m"], p["bn2_v"])
    s3, t3 = bn_fold(p["bn3_g"], p["bn3_b"], p["bn3_m"], p["bn3_v"])

    # stage 1: conv1 (1x1) + bn1 per padded pixel.  Augmented (CIN+1) -> (PLANES+1):
    # the indicator row carries the bn1 shift and a constant-1 output column; at the
    # pad halo (data=0, indicator=0) relu(h1) is exactly 0.
    w1 = p["conv1_w"][:, :, 0, 0].T * s1[None, :]                    # (CIN, PLANES)
    w1_aug = np.zeros((INPLANES + 1, PL1), np.float32)
    w1_aug[:INPLANES, :PLANES] = w1
    w1_aug[INPLANES, :PLANES] = t1
    w1_aug[INPLANES, PLANES] = 1.0
    w1_bd = np.kron(np.eye(W + 2, dtype=np.float32), w1_aug)         # (306, 90)

    # stage 2: conv2 (3x3) + bn2 as three banded lane-block matrices (one per kh).
    w2s = p["conv2_w"] * s2[:, None, None, None]                     # (O, I, KH, KW)
    B = np.zeros((KH, H1_LANES, H2_LANES), np.float32)
    for kh in range(KH):
        for w_out in range(W):
            for kw in range(KW):
                pw = w_out + kw                                      # padded column
                B[kh, pw * PL1:pw * PL1 + PLANES,
                  w_out * PL1:w_out * PL1 + PLANES] = w2s[:, :, kh, kw].T   # (ci, co)
            if kh == 1:   # center tap: indicator == 1 at every valid output pixel
                pwc = w_out + 1
                B[kh, pwc * PL1 + PLANES, w_out * PL1:w_out * PL1 + PLANES] = t2
                B[kh, pwc * PL1 + PLANES, w_out * PL1 + PLANES] = 1.0        # carry constant

    # stage 3: conv3 (1x1) + bn3 (shift via the carried constant column).
    w3 = p["conv3_w"][:, :, 0, 0].T * s3[None, :]                    # (PLANES, COUT)
    w3_aug = np.zeros((PL1, COUT), np.float32)
    w3_aug[:PLANES] = w3
    w3_aug[PLANES] = t3
    w3_bd = np.kron(np.eye(W, dtype=np.float32), w3_aug)             # (80, 256)

    # constant indicator plane: 1 in the interior, 0 on the pad halo, (H+2, N, W+2, 1).
    ind = np.zeros((H + 2, N, W + 2, 1), np.float32)
    ind[1:H + 1, :, 1:W + 1, :] = 1.0

    return {"w1_bd": jnp.asarray(w1_bd), "B": jnp.asarray(B),
            "w3_bd": jnp.asarray(w3_bd), "ind": jnp.asarray(ind)}


# ------------------------------ fused forward --------------------------------
@jax.jit
def bottleneck_forward(x_nchw, prepared):
    # (N,C,H,W) -> (H,N,W,C): rows are h-major / n-minor so the conv2 row shifts
    # (stride N) never cross an image boundary; lanes are w-major / c-minor.
    xt = jnp.transpose(x_nchw, (2, 0, 3, 1))                          # (H, N, W, C)
    xres = xt.reshape(ROWS_OUT, LANES_OUT)                            # (32, 256)
    xpad = jnp.pad(xt, ((1, 1), (0, 0), (1, 1), (0, 0)))              # (H+2, N, W+2, C)
    xaug = jnp.concatenate([xpad, prepared["ind"]], axis=-1)          # (H+2, N, W+2, C+1)
    xpad2d = xaug.reshape(ROWS_PAD, LANES_PAD)                        # (36, 306)

    out2d = pl.pallas_call(
        bottleneck_kernel,
        out_shape=jax.ShapeDtypeStruct((ROWS_OUT, LANES_OUT), jnp.float32),
        grid_spec=pltpu.PrefetchScalarGridSpec(
            num_scalar_prefetch=0,
            grid=(1,),                         # single step: everything fits in VMEM
            in_specs=[
                pl.BlockSpec((ROWS_PAD, LANES_PAD), lambda i: (0, 0)),
                pl.BlockSpec((ROWS_OUT, LANES_OUT), lambda i: (0, 0)),
                pl.BlockSpec((LANES_PAD, H1_LANES), lambda i: (0, 0)),
                pl.BlockSpec((KH, H1_LANES, H2_LANES), lambda i: (0, 0, 0)),
                pl.BlockSpec((H2_LANES, LANES_OUT), lambda i: (0, 0)),
            ],
            out_specs=pl.BlockSpec((ROWS_OUT, LANES_OUT), lambda i: (0, 0)),
        ),
        compiler_params=pltpu.CompilerParams(
            dimension_semantics=("arbitrary",)),
    )(xpad2d, xres, prepared["w1_bd"], prepared["B"], prepared["w3_bd"])

    # (H*N, W*COUT) -> (H, N, W, COUT) -> NCHW
    return jnp.transpose(out2d.reshape(H, N, W, COUT), (1, 3, 0, 2))


# -------------------------- pure-JAX reference -------------------------------
def bottleneck_reference(x_nchw, params):
    def bn(x, g, b, m, v):
        inv = 1.0 / jnp.sqrt(v.reshape(1, -1, 1, 1) + EPS)
        return (x - m.reshape(1, -1, 1, 1)) * inv * g.reshape(1, -1, 1, 1) \
            + b.reshape(1, -1, 1, 1)

    def conv(x, w, pad=0):
        return lax.conv_general_dilated(
            x, w, window_strides=(1, 1), padding=((pad, pad), (pad, pad)),
            dimension_numbers=("NCHW", "OIHW", "NCHW"))

    out = jnp.maximum(bn(conv(x_nchw, params["conv1_w"]),
                         params["bn1_g"], params["bn1_b"],
                         params["bn1_m"], params["bn1_v"]), 0.0)
    out = jnp.maximum(bn(conv(out, params["conv2_w"], pad=1),
                         params["bn2_g"], params["bn2_b"],
                         params["bn2_m"], params["bn2_v"]), 0.0)
    out = bn(conv(out, params["conv3_w"]),
             params["bn3_g"], params["bn3_b"], params["bn3_m"], params["bn3_v"])
    return jnp.maximum(out + x_nchw, 0.0)


if __name__ == "__main__":
    key = jax.random.PRNGKey(0)
    ks = jax.random.split(key, 16)

    x = jax.random.normal(ks[0], (N, INPLANES, H, W), jnp.float32)    # NCHW input

    params = {
        "conv1_w": 0.2 * jax.random.normal(ks[1], (PLANES, INPLANES, 1, 1), jnp.float32),
        "conv2_w": 0.2 * jax.random.normal(ks[2], (PLANES, PLANES, KH, KW), jnp.float32),
        "conv3_w": 0.2 * jax.random.normal(ks[3], (COUT, PLANES, 1, 1), jnp.float32),
        "bn1_g": 1.0 + 0.1 * jax.random.normal(ks[4], (PLANES,), jnp.float32),
        "bn1_b": 0.1 * jax.random.normal(ks[5], (PLANES,), jnp.float32),
        "bn1_m": 0.1 * jax.random.normal(ks[6], (PLANES,), jnp.float32),
        "bn1_v": jax.random.uniform(ks[7], (PLANES,), jnp.float32, 0.5, 1.5),
        "bn2_g": 1.0 + 0.1 * jax.random.normal(ks[8], (PLANES,), jnp.float32),
        "bn2_b": 0.1 * jax.random.normal(ks[9], (PLANES,), jnp.float32),
        "bn2_m": 0.1 * jax.random.normal(ks[10], (PLANES,), jnp.float32),
        "bn2_v": jax.random.uniform(ks[11], (PLANES,), jnp.float32, 0.5, 1.5),
        "bn3_g": 1.0 + 0.1 * jax.random.normal(ks[12], (COUT,), jnp.float32),
        "bn3_b": 0.1 * jax.random.normal(ks[13], (COUT,), jnp.float32),
        "bn3_m": 0.1 * jax.random.normal(ks[14], (COUT,), jnp.float32),
        "bn3_v": jax.random.uniform(ks[15], (COUT,), jnp.float32, 0.5, 1.5),
    }

    prepared = prepare_bottleneck(params)     # one-time weight prep (hoisted)

    out = jax.block_until_ready(bottleneck_forward(x, prepared))
    ref = bottleneck_reference(x, params)

    assert out.shape == (N, COUT, H, W), out.shape
    assert jnp.allclose(out, ref, rtol=1e-4, atol=1e-4), float(jnp.max(jnp.abs(out - ref)))

    print("KERNEL_OK")
</pallas_src>

<mosaic_0001>
module attributes {stable_mosaic.version = 11 : i64} {
  func.func @bottleneck_kernel(%arg0: i32, %arg1: memref<36x306xf32, #tpu.memory_space<vmem>>, %arg2: memref<32x256xf32, #tpu.memory_space<vmem>>, %arg3: memref<306x90xf32, #tpu.memory_space<vmem>>, %arg4: memref<3x90x80xf32, #tpu.memory_space<vmem>>, %arg5: memref<80x256xf32, #tpu.memory_space<vmem>>, %arg6: memref<32x256xf32, #tpu.memory_space<vmem>>) attributes {dimension_semantics = [#tpu.dimension_semantics<arbitrary>], iteration_bounds = array<i64: 1>, scalar_prefetch = 0 : i64, scratch_operands = 0 : i64, tpu.core_type = #tpu.core_type<tc>, window_params = [{pipeline_mode = #tpu.pipeline_mode<synchronous>, transform_indices = @transform_0, window_bounds = array<i64: 36, 306>}, {pipeline_mode = #tpu.pipeline_mode<synchronous>, transform_indices = @transform_1, window_bounds = array<i64: 32, 256>}, {pipeline_mode = #tpu.pipeline_mode<synchronous>, transform_indices = @transform_2, window_bounds = array<i64: 306, 90>}, {pipeline_mode = #tpu.pipeline_mode<synchronous>, transform_indices = @transform_3, window_bounds = array<i64: 3, 90, 80>}, {pipeline_mode = #tpu.pipeline_mode<synchronous>, transform_indices = @transform_4, window_bounds = array<i64: 80, 256>}, {pipeline_mode = #tpu.pipeline_mode<synchronous>, transform_indices = @transform_5, window_bounds = array<i64: 32, 256>}]} {
    %c0 = arith.constant 0 : index
    %c0_0 = arith.constant 0 : index
    %0 = vector.load %arg1[%c0, %c0_0] : memref<36x306xf32, #tpu.memory_space<vmem>>, vector<36x306xf32>
    %c0_1 = arith.constant 0 : index
    %c0_2 = arith.constant 0 : index
    %1 = vector.load %arg3[%c0_1, %c0_2] : memref<306x90xf32, #tpu.memory_space<vmem>>, vector<306x90xf32>
    %cst = arith.constant dense<0.000000e+00> : vector<36x90xf32>
    %2 = tpu.matmul %0, %1, %cst {dimension_numbers = #tpu.dot_dimension_numbers<[1], [0], [0], [1], [0, 0, 1, 1], [], []>} : vector<36x306xf32>, vector<306x90xf32>, vector<36x90xf32> -> vector<36x90xf32>
    %cst_3 = arith.constant 0.000000e+00 : f32
    %3 = vector.broadcast %cst_3 : f32 to vector<36x90xf32>
    %4 = arith.maximumf %2, %3 : vector<36x90xf32>
    %cst_4 = arith.constant 0.000000e+00 : f32
    %5 = vector.broadcast %cst_4 : f32 to vector<32x80xf32>
    %6 = vector.extract_strided_slice %4 {offsets = [0, 0], sizes = [32, 90], strides = [1, 1]} : vector<36x90xf32> to vector<32x90xf32>
    %c0_5 = arith.constant 0 : index
    %c0_6 = arith.constant 0 : index
    %c0_7 = arith.constant 0 : index
    %7 = vector.load %arg4[%c0_5, %c0_6, %c0_7] : memref<3x90x80xf32, #tpu.memory_space<vmem>>, vector<1x90x80xf32>
    %8 = vector.shape_cast %7 : vector<1x90x80xf32> to vector<90x80xf32>
    %cst_8 = arith.constant dense<0.000000e+00> : vector<32x80xf32>
    %9 = tpu.matmul %6, %8, %cst_8 {dimension_numbers = #tpu.dot_dimension_numbers<[1], [0], [0], [1], [0, 0, 1, 1], [], []>} : vector<32x90xf32>, vector<90x80xf32>, vector<32x80xf32> -> vector<32x80xf32>
    %10 = arith.addf %5, %9 : vector<32x80xf32>
    %11 = vector.extract_strided_slice %4 {offsets = [2, 0], sizes = [32, 90], strides = [1, 1]} : vector<36x90xf32> to vector<32x90xf32>
    %c1 = arith.constant 1 : index
    %c0_9 = arith.constant 0 : index
    %c0_10 = arith.constant 0 : index
    %12 = vector.load %arg4[%c1, %c0_9, %c0_10] : memref<3x90x80xf32, #tpu.memory_space<vmem>>, vector<1x90x80xf32>
    %13 = vector.shape_cast %12 : vector<1x90x80xf32> to vector<90x80xf32>
    %cst_11 = arith.constant dense<0.000000e+00> : vector<32x80xf32>
    %14 = tpu.matmul %11, %13, %cst_11 {dimension_numbers = #tpu.dot_dimension_numbers<[1], [0], [0], [1], [0, 0, 1, 1], [], []>} : vector<32x90xf32>, vector<90x80xf32>, vector<32x80xf32> -> vector<32x80xf32>
    %15 = arith.addf %10, %14 : vector<32x80xf32>
    %16 = vector.extract_strided_slice %4 {offsets = [4, 0], sizes = [32, 90], strides = [1, 1]} : vector<36x90xf32> to vector<32x90xf32>
    %c2 = arith.constant 2 : index
    %c0_12 = arith.constant 0 : index
    %c0_13 = arith.constant 0 : index
    %17 = vector.load %arg4[%c2, %c0_12, %c0_13] : memref<3x90x80xf32, #tpu.memory_space<vmem>>, vector<1x90x80xf32>
    %18 = vector.shape_cast %17 : vector<1x90x80xf32> to vector<90x80xf32>
    %cst_14 = arith.constant dense<0.000000e+00> : vector<32x80xf32>
    %19 = tpu.matmul %16, %18, %cst_14 {dimension_numbers = #tpu.dot_dimension_numbers<[1], [0], [0], [1], [0, 0, 1, 1], [], []>} : vector<32x90xf32>, vector<90x80xf32>, vector<32x80xf32> -> vector<32x80xf32>
    %20 = arith.addf %15, %19 : vector<32x80xf32>
    %cst_15 = arith.constant 0.000000e+00 : f32
    %21 = vector.broadcast %cst_15 : f32 to vector<32x80xf32>
    %22 = arith.maximumf %20, %21 : vector<32x80xf32>
    %c0_16 = arith.constant 0 : index
    %c0_17 = arith.constant 0 : index
    %23 = vector.load %arg5[%c0_16, %c0_17] : memref<80x256xf32, #tpu.memory_space<vmem>>, vector<80x256xf32>
    %cst_18 = arith.constant dense<0.000000e+00> : vector<32x256xf32>
    %24 = tpu.matmul %22, %23, %cst_18 {dimension_numbers = #tpu.dot_dimension_numbers<[1], [0], [0], [1], [0, 0, 1, 1], [], []>} : vector<32x80xf32>, vector<80x256xf32>, vector<32x256xf32> -> vector<32x256xf32>
    %c0_19 = arith.constant 0 : index
    %c0_20 = arith.constant 0 : index
    %25 = vector.load %arg2[%c0_19, %c0_20] : memref<32x256xf32, #tpu.memory_space<vmem>>, vector<32x256xf32>
    %26 = arith.addf %24, %25 : vector<32x256xf32>
    %cst_21 = arith.constant 0.000000e+00 : f32
    %27 = vector.broadcast %cst_21 : f32 to vector<32x256xf32>
    %28 = arith.maximumf %26, %27 : vector<32x256xf32>
    %c0_22 = arith.constant 0 : index
    %c0_23 = arith.constant 0 : index
    %29 = vector.load %arg6[%c0_22, %c0_23] : memref<32x256xf32, #tpu.memory_space<vmem>>, vector<32x256xf32>
    tpu.vector_store %arg6[%c0_22, %c0_23], %28 {strides = array<i32>} : memref<32x256xf32, #tpu.memory_space<vmem>>, vector<32x256xf32>,
    return
  }
  func.func @transform_0(%arg0: i32) -> (i32, i32) {
    %c0_i32 = arith.constant 0 : i32
    %c0_i32_0 = arith.constant 0 : i32
    %c0_i32_1 = arith.constant 0 : i32
    return %c0_i32, %c0_i32_0 : i32, i32
  }
  func.func @transform_1(%arg0: i32) -> (i32, i32) {
    %c0_i32 = arith.constant 0 : i32
    %c0_i32_0 = arith.constant 0 : i32
    %c0_i32_1 = arith.constant 0 : i32
    return %c0_i32, %c0_i32_0 : i32, i32
  }
  func.func @transform_2(%arg0: i32) -> (i32, i32) {
    %c0_i32 = arith.constant 0 : i32
    %c0_i32_0 = arith.constant 0 : i32
    %c0_i32_1 = arith.constant 0 : i32
    return %c0_i32, %c0_i32_0 : i32, i32
  }
  func.func @transform_3(%arg0: i32) -> (i32, i32, i32) {
    %c0_i32 = arith.constant 0 : i32
    %c0_i32_0 = arith.constant 0 : i32
    %c0_i32_1 = arith.constant 0 : i32
    %c0_i32_2 = arith.constant 0 : i32
    return %c0_i32, %c0_i32_0, %c0_i32_1 : i32, i32, i32
  }
  func.func @transform_4(%arg0: i32) -> (i32, i32) {
    %c0_i32 = arith.constant 0 : i32
    %c0_i32_0 = arith.constant 0 : i32
    %c0_i32_1 = arith.constant 0 : i32
    return %c0_i32, %c0_i32_0 : i32, i32
  }
  func.func @transform_5(%arg0: i32) -> (i32, i32) {
    %c0_i32 = arith.constant 0 : i32
    %c0_i32_0 = arith.constant 0 : i32
    %c0_i32_1 = arith.constant 0 : i32
    return %c0_i32, %c0_i32_0 : i32, i32
  }
}

</mosaic_0001>

<bundles_post_ra>
// kernel: bottleneck_forward.1
= control target key start
LH: loop header
LB: loop body
LE: loop exit
PB: predicated region body
PF: predicated region fallthrough
CT: control target
= control target key end

     0   :  { %vm90_vm0 = vcmask 1041408   ;;  %vm74_vm1 = vcmask 408576   ;;  %vm235_vm2 = vcmask 736256   ;;  %vm225_vm3 = vcmask 1045504   ;;  %s1020_s2 = inlined_call_operand.vmem [shape: f32[306,90], index: 2, kind: input, shape index: {}]   ;;  %s1021_s0 = inlined_call_operand.vmem [shape: f32[36,306], index: 0, kind: input, shape index: {}]   ;;  %s1022_s3 = inlined_call_operand.vmem [shape: f32[3,90,80], index: 3, kind: input, shape index: {}]   ;;  %s1023_s4 = inlined_call_operand.vmem [shape: f32[80,256], index: 4, kind: input, shape index: {}]   ;;  %s1024_s1 = inlined_call_operand.vmem [shape: f32[32,256], index: 1, kind: input, shape index: {}]   ;;  %s1025_s5 = inlined_call_operand.vmem [shape: f32[32,256], index: 5, kind: output, shape index: {}]  }
   0x1   :  { %v50_v0 = vld [vmem:[%s1020_s2 + $0x78] sm:$0xff]  ;;  %v49_v2 = vld [vmem:[%s1020_s2 + $0x70] sm:$0xff]  ;;  %v48_v4 = vld [vmem:[%s1020_s2 + $0x68] sm:$0xff]  ;;  %vm329_vm4 = vcmask 1043456   ;;  %vm415_vm5 = vcmask 654336  }
   0x2   :  { %v66_v1 = vld [vmem:[%s1020_s2 + $0xf8] sm:$0xff]  ;;  %94 = vmatpush.msra.mxu0 %v50_v0  ;;  %v65_v3 = vld [vmem:[%s1020_s2 + $0xf0] sm:$0xff]  ;;  %v64_v5 = vld [vmem:[%s1020_s2 + $0xe8] sm:$0xff] }
   0x3   :  { %126 = vmatpush.msra.mxu1 %v66_v1  ;;  %v47_v6 = vld [vmem:[%s1020_s2 + $0x60] sm:$0xff]  ;;  %v73_v8 = vld [vmem:[%s1020_s2 + $0x130] sm:$0x3]  ;;  %v46_v9 = vld [vmem:[%s1020_s2 + $0x58] sm:$0xff] }
   0x4   :  { %95 = vmatpush.msra.mxu0 %v49_v2  ;;  %v63_v7 = vld [vmem:[%s1020_s2 + $0xe0] sm:$0xff]  ;;  %v62_v10 = vld [vmem:[%s1020_s2 + $0xd8] sm:$0xff]  ;;  %506 = vmatpush.msk.msra.mxu2 %vm90_vm0, %v73_v8  ;;  %v72_v11 = vld [vmem:[%s1020_s2 + $0x128] sm:$0xff] }
   0x5   :  { %127 = vmatpush.msra.mxu1 %v65_v3  ;;  %v71_v12 = vld [vmem:[%s1020_s2 + $0x120] sm:$0xff]  ;;  %v45_v13 = vld [vmem:[%s1020_s2 + $0x50] sm:$0xff]  ;;  %v70_v15 = vld [vmem:[%s1020_s2 + $0x118] sm:$0xff] }
   0x6   :  { %96 = vmatpush.msra.mxu0 %v48_v4  ;;  %v61_v14 = vld [vmem:[%s1020_s2 + $0xd0] sm:$0xff]  ;;  %168 = vmatpush.msra.mxu2 %v72_v11  ;;  %v44_v16 = vld [vmem:[%s1020_s2 + $0x48] sm:$0xff]  ;;  %v43_v19 = vld [vmem:[%s1020_s2 + $0x40] sm:$0xff] }
   0x7   :  { %128 = vmatpush.msra.mxu1 %v64_v5  ;;  %v60_v17 = vld [vmem:[%s1020_s2 + $0xc8] sm:$0xff]  ;;  %v69_v18 = vld [vmem:[%s1020_s2 + $0x110] sm:$0xff]  ;;  %v59_v20 = vld [vmem:[%s1020_s2 + $0xc0] sm:$0xff] }
   0x8   :  { %97 = vmatpush.msra.mxu0 %v47_v6  ;;  %169 = vmatpush.msra.mxu2 %v71_v12  ;;  %v68_v21 = vld [vmem:[%s1020_s2 + $0x108] sm:$0xff]  ;;  %v42_v22 = vld [vmem:[%s1020_s2 + $0x38] sm:$0xff]  ;;  %v67_v24 = vld [vmem:[%s1020_s2 + $0x100] sm:$0xff] }
   0x9   :  { %129 = vmatpush.msra.mxu1 %v63_v7  ;;  %v58_v23 = vld [vmem:[%s1020_s2 + $0xb8] sm:$0xff]  ;;  %v41_v25 = vld [vmem:[%s1020_s2 + $0x30] sm:$0xff]  ;;  %v40_v28 = vld [vmem:[%s1020_s2 + $0x28] sm:$0xff] }
   0xa   :  { %98 = vmatpush.msra.mxu0 %v46_v9  ;;  %170 = vmatpush.msra.mxu2 %v70_v15  ;;  %v57_v26 = vld [vmem:[%s1020_s2 + $0xb0] sm:$0xff]  ;;  %v56_v29 = vld [vmem:[%s1020_s2 + $0xa8] sm:$0xff]  ;;  %v39_v30 = vld [vmem:[%s1020_s2 + $0x20] sm:$0xff] }
   0xb   :  { %130 = vmatpush.msra.mxu1 %v62_v10  ;;  %v22_v27 = vld [vmem:[%s1021_s0 + $0x10] sm:$0xff]  ;;  %v55_v31 = vld [vmem:[%s1020_s2 + $0xa0] sm:$0xff]  ;;  %v38_v32 = vld [vmem:[%s1020_s2 + $0x18] sm:$0xff] }
   0xc   :  { %99 = vmatpush.msra.mxu0 %v45_v13  ;;  %171 = vmatpush.msra.mxu2 %v69_v18  ;;  %v54_v33 = vld [vmem:[%s1020_s2 + $0x98] sm:$0xff]  ;;  %v37_v34 = vld [vmem:[%s1020_s2 + $0x10] sm:$0xff]  ;;  %v25_v36 = vld [vmem:[%s1021_s0 + $0x28] sm:$0xff] }
   0xd   :  { %131 = vmatpush.msra.mxu1 %v61_v14  ;;  %v53_v35 = vld [vmem:[%s1020_s2 + $0x90] sm:$0xff]  ;;  %v36_v37 = vld [vmem:[%s1020_s2 + $0x8] sm:$0xff]  ;;  %v35_v39 = vld [vmem:[%s1020_s2] sm:$0xff] }
   0xe   :  { %100 = vmatpush.msra.mxu0 %v44_v16  ;;  %172 = vmatpush.msra.mxu2 %v68_v21  ;;  %v52_v38 = vld [vmem:[%s1020_s2 + $0x88] sm:$0xff]  ;;  %v51_v40 = vld [vmem:[%s1020_s2 + $0x80] sm:$0xff]  ;;  %v206_v43 = vld [vmem:[%s1022_s3 + $0x58] sm:$0x3] }
   0xf   :  { %132 = vmatpush.msra.mxu1 %v60_v17  ;;  %v20_v41 = vld [vmem:[%s1021_s0] sm:$0xff]  ;;  %v21_v42 = vld [vmem:[%s1021_s0 + $0x8] sm:$0xff]  ;;  %v205_v44 = vld [vmem:[%s1022_s3 + $0x50] sm:$0xff] }
  0x10   :  { %101 = vmatpush.msra.mxu0 %v43_v19  ;;  %173 = vmatpush.msra.mxu2 %v67_v24  ;;  %v28_v45 = vld [vmem:[%s1021_s0 + $0x40] sm:$0xff]  ;;  %v204_v46 = vld [vmem:[%s1022_s3 + $0x48] sm:$0xff]  ;;  %v523_v47 = vld [vmem:[%s1022_s3 + $0xb8] sm:$0x3] }
  0x11   :  { %133 = vmatpush.msra.mxu1 %v59_v20  ;;  %507 = vmatmul.msk.f32.vlgmr.msra.gmra.mxu2 %vm74_vm1, %v22_v27  ;;  %v522_v48 = vld [vmem:[%s1022_s3 + $0xb0] sm:$0xff]  ;;  %v203_v49 = vld [vmem:[%s1022_s3 + $0x40] sm:$0xff]  ;;  %v521_v50 = vld [vmem:[%s1022_s3 + $0xa8] sm:$0xff] }
  0x12   :  { %102 = vmatpush.msra.mxu0 %v42_v22  ;;  %529 = vmatpush.msk.msrb.mxu2 %vm90_vm0, %v206_v43  ;;  %v23_v51 = vld [vmem:[%s1021_s0 + $0x18] sm:$0xff]  ;;  %v24_v52 = vld [vmem:[%s1021_s0 + $0x20] sm:$0xff]  ;;  %v201_v54 = vld [vmem:[%s1022_s3 + $0x30] sm:$0xff] }
  0x13   :  { %134 = vmatpush.msra.mxu1 %v58_v23  ;;  %524 = vmatpush.msk.msra.mxu3 %vm90_vm0, %v523_v47  ;;  %v202_v53 = vld [vmem:[%s1022_s3 + $0x38] sm:$0xff]  ;;  %v200_v56 = vld [vmem:[%s1022_s3 + $0x28] sm:$0xff]  ;;  %v199_v57 = vld [vmem:[%s1022_s3 + $0x20] sm:$0xff] }
  0x14   :  { %103 = vmatpush.msra.mxu0 %v41_v25  ;;  %292 = vmatpush.msrb.mxu2 %v205_v44  ;;  %v31_v55 = vld [vmem:[%s1021_s0 + $0x58] sm:$0xff]  ;;  %v26_v58 = vld [vmem:[%s1021_s0 + $0x30] sm:$0xff]  ;;  %v29_v61 = vld [vmem:[%s1021_s0 + $0x48] sm:$0xff] }
  0x15   :  { %135 = vmatpush.msra.mxu1 %v57_v26  ;;  %252 = vmatpush.msra.mxu3 %v522_v48  ;;  %v27_v59 = vld [vmem:[%s1021_s0 + $0x38] sm:$0xff]  ;;  %v34_v60 = vld [vmem:[%s1021_s0 + $0x70] sm:$0xf]  ;;  %v32_v63 = vld [vmem:[%s1021_s0 + $0x60] sm:$0xf] }
  0x16   :  { %104 = vmatpush.msra.mxu0 %v40_v28  ;;  %293 = vmatpush.msrb.mxu2 %v204_v46  ;;  %v30_v62 = vld [vmem:[%s1021_s0 + $0x50] sm:$0xff]  ;;  %v33_v0 = vld [vmem:[%s1021_s0 + $0x68] sm:$0xf]  ;;  %v198_v1 = vld [vmem:[%s1022_s3 + $0x18] sm:$0xff] }
  0x17   :  { %136 = vmatpush.msra.mxu1 %v56_v29  ;;  %253 = vmatpush.msra.mxu3 %v521_v50  ;;  %v520_v2 = vld [vmem:[%s1022_s3 + $0xa0] sm:$0xff]  ;;  %v197_v3 = vld [vmem:[%s1022_s3 + $0x10] sm:$0xff]  ;;  %v519_v4 = vld [vmem:[%s1022_s3 + $0x98] sm:$0xff] }
  0x18   :  { %105 = vmatpush.msra.mxu0 %v39_v30  ;;  %294 = vmatpush.msrb.mxu2 %v203_v49  ;;  %v196_v5 = vld [vmem:[%s1022_s3 + $0x8] sm:$0xff]  ;;  %v518_v6 = vld [vmem:[%s1022_s3 + $0x90] sm:$0xff]  ;;  %v195_v7 = vld [vmem:[%s1022_s3] sm:$0xff] }
  0x19   :  { %137 = vmatpush.msra.mxu1 %v55_v31  ;;  %508 = vmatmul.msk.f32.gmra.mxu2 %vm74_vm1, %v25_v36  ;;  %v517_v8 = vld [vmem:[%s1022_s3 + $0x88] sm:$0xff]  ;;  %v516_v9 = vld [vmem:[%s1022_s3 + $0x80] sm:$0xff]  ;;  %v515_v10 = vld [vmem:[%s1022_s3 + $0x78] sm:$0xff] }
  0x1a   :  { %106 = vmatpush.msra.mxu0 %v38_v32  ;;  %295 = vmatpush.msrb.mxu2 %v202_v53  ;;  %v514_v11 = vld [vmem:[%s1022_s3 + $0x70] sm:$0xff]  ;;  %v513_v12 = vld [vmem:[%s1022_s3 + $0x68] sm:$0xff]  ;;  %v512_v13 = vld [vmem:[%s1022_s3 + $0x60] sm:$0xff] }
  0x1b   :  { %138 = vmatpush.msra.mxu1 %v54_v33  ;;  %254 = vmatpush.msra.mxu3 %v520_v2  ;;  %v545_v14 = vld [vmem:[%s1022_s3 + $0x118] sm:$0x3]  ;;  %v544_v15 = vld [vmem:[%s1022_s3 + $0x110] sm:$0xff]  ;;  %v543_v16 = vld [vmem:[%s1022_s3 + $0x108] sm:$0xff] }
  0x1c   :  { %107 = vmatpush.msra.mxu0 %v37_v34  ;;  %296 = vmatpush.msrb.mxu2 %v201_v54  ;;  %v542_v18 = vld [vmem:[%s1022_s3 + $0x100] sm:$0xff]  ;;  %v541_v19 = vld [vmem:[%s1022_s3 + $0xf8] sm:$0xff]  ;;  %v540_v23 = vld [vmem:[%s1022_s3 + $0xf0] sm:$0xff] }
  0x1d   :  { %139 = vmatpush.msra.mxu1 %v53_v35  ;;  %255 = vmatpush.msra.mxu3 %v519_v4  ;;  %v539_v27 = vld [vmem:[%s1022_s3 + $0xe8] sm:$0xff]  ;;  %v538_v28 = vld [vmem:[%s1022_s3 + $0xe0] sm:$0xff]  ;;  %v537_v31 = vld [vmem:[%s1022_s3 + $0xd8] sm:$0xff] }
  0x1e   :  { %108 = vmatpush.msra.mxu0 %v36_v37  ;;  %297 = vmatpush.msrb.mxu2 %v200_v56  ;;  %v536_v33 = vld [vmem:[%s1022_s3 + $0xd0] sm:$0xff]  ;;  %v535_v36 = vld [vmem:[%s1022_s3 + $0xc8] sm:$0xff] }
  0x1f   :  { %140 = vmatpush.msra.mxu1 %v52_v38  ;;  %256 = vmatpush.msra.mxu3 %v518_v6  ;;  %v534_v38 = vld [vmem:[%s1022_s3 + $0xc0] sm:$0xff] }
  0x20   :  { %109 = vmatpush.msra.mxu0 %v35_v39  ;;  %298 = vmatpush.msrb.mxu2 %v199_v57 }
  0x21   :  { %141 = vmatpush.msra.mxu1 %v51_v40  ;;  %110 = vmatmul.f32.vlgmr.msra.gmra.mxu0 %v20_v41 }
  0x22   :  { %142 = vmatmul.f32.vlgmr.msra.gmra.mxu1 %v21_v42  ;;  %509 = vmatmul.msk.f32.gmra.mxu2 %vm74_vm1, %v28_v45 }
  0x23   :  { %299 = vmatpush.msrb.mxu2 %v198_v1  ;;  %257 = vmatpush.msra.mxu3 %v517_v8 }
  0x25   :  { %300 = vmatpush.msrb.mxu2 %v197_v3  ;;  %258 = vmatpush.msra.mxu3 %v516_v9 }
  0x27   :  { %301 = vmatpush.msrb.mxu2 %v196_v5  ;;  %259 = vmatpush.msra.mxu3 %v515_v10  ;;  %v405_v10 = vld [vmem:[%s1023_s4 + $0x90] sm:$0xff] }
  0x28   :  { %434 = vmatpush.msrb.mxu0 %v405_v10 }
  0x29   :  { %113 = vmatmul.f32.gmra.mxu0 %v23_v51  ;;  %302 = vmatpush.msrb.mxu2 %v195_v7 }
  0x2a   :  { %145 = vmatmul.f32.gmra.mxu1 %v24_v52  ;;  %510 = vmatmul.msk.f32.gmra.mxu2 %vm74_vm1, %v31_v55 }
  0x2b   :  { %260 = vmatpush.msra.mxu3 %v514_v11  ;;  %v406_v11 = vld [vmem:[%s1023_s4 + $0x98] sm:$0xff]  ;;  %559 = vmatpush.msra.mxu2 %v405_v10 }
  0x2c   :  { %463 = vmatpush.msrb.mxu1 %v406_v11 }
  0x2d   :  { %261 = vmatpush.msra.mxu3 %v513_v12  ;;  %v403_v12 = vld [vmem:[%s1023_s4 + $0x80] sm:$0xff] }
  0x2e   :  { %435 = vmatpush.msrb.mxu0 %v403_v12  ;;  %560 = vmatpush.msra.mxu2 %v403_v12 }
  0x2f   :  { %262 = vmatpush.msra.mxu3 %v512_v13  ;;  %v404_v13 = vld [vmem:[%s1023_s4 + $0x88] sm:$0xff] }
  0x30   :  { %464 = vmatpush.msrb.mxu1 %v404_v13 }
  0x31   :  { %116 = vmatmul.f32.gmra.mxu0 %v26_v58  ;;  %546 = vmatpush.msk.msrb.mxu3 %vm90_vm0, %v545_v14  ;;  %v401_v14 = vld [vmem:[%s1023_s4 + $0x70] sm:$0xff] }
  0x32   :  { %148 = vmatmul.f32.gmra.mxu1 %v27_v59  ;;  %511 = vmatmul.msk.f32.gmra.mxu2 %vm74_vm1, %v34_v60 }
  0x33   :  { %355 = vmatpush.msrb.mxu3 %v544_v15  ;;  %v402_v15 = vld [vmem:[%s1023_s4 + $0x78] sm:$0xff]  ;;  %436 = vmatpush.msrb.mxu0 %v401_v14 }
  0x34   :  { %465 = vmatpush.msrb.mxu1 %v402_v15  ;;  %561 = vmatpush.msra.mxu2 %v401_v14  ;;  %v413_v14 = vld [vmem:[%s1024_s1 + $0x30] sm:$0xff] }
  0x35   :  { %356 = vmatpush.msrb.mxu3 %v543_v16  ;;  %v399_v16 = vld [vmem:[%s1023_s4 + $0x60] sm:$0xff] }
  0x36   :  { %437 = vmatpush.msrb.mxu0 %v399_v16  ;;  %562 = vmatpush.msra.mxu2 %v399_v16 }
  0x37   :  { %357 = vmatpush.msrb.mxu3 %v542_v18  ;;  %v397_v18 = vld [vmem:[%s1023_s4 + $0x50] sm:$0xff] }
  0x38   :  { %438 = vmatpush.msrb.mxu0 %v397_v18  ;;  %563 = vmatpush.msra.mxu2 %v397_v18 }
  0x39   :  { %119 = vmatmul.f32.gmra.mxu0 %v29_v61  ;;  %358 = vmatpush.msrb.mxu3 %v541_v19  ;;  %v398_v19 = vld [vmem:[%s1023_s4 + $0x58] sm:$0xff] }
  0x3a   :  { %151 = vmatmul.f32.gmra.mxu1 %v30_v62 }
  0x3b   :  { %359 = vmatpush.msrb.mxu3 %v540_v23  ;;  %v394_v23 = vld [vmem:[%s1023_s4 + $0x38] sm:$0xff] }
  0x3d   :  { %360 = vmatpush.msrb.mxu3 %v539_v27  ;;  %v389_v27 = vld [vmem:[%s1023_s4 + $0x10] sm:$0xff] }
  0x3f   :  { %361 = vmatpush.msrb.mxu3 %v538_v28  ;;  %v390_v28 = vld [vmem:[%s1023_s4 + $0x18] sm:$0xff] }
  0x41   :  { %122 = vmatmul.f32.gmra.mxu0 %v32_v63  ;;  %362 = vmatpush.msrb.mxu3 %v537_v31 }
  0x42   :  { %154 = vmatmul.f32.gmra.mxu1 %v33_v0 }
  0x43   :  { %363 = vmatpush.msrb.mxu3 %v536_v33 }
  0x45   :  { %364 = vmatpush.msrb.mxu3 %v535_v36 }
  0x47   :  { %365 = vmatpush.msrb.mxu3 %v534_v38 }
  0x94   :  { %v175_v17 = vpop.f32.mrf.mxu2 }
  0x9c   :  { %v178_v24 = vpop.f32.mrf.mxu2 }
  0x9e   :  { %v111_v20 = vpop.f32.mrf.mxu0 }
  0x9f   :  { %v143_v21 = vpop.f32.mrf.mxu1 }
  0xa0   :  { %v144_v22 = vadd.f32 %v143_v21, %v111_v20  ;;  %v395_v20 = vld [vmem:[%s1023_s4 + $0x40] sm:$0xff]  ;;  %v396_v21 = vld [vmem:[%s1023_s4 + $0x48] sm:$0xff] }
  0xa1   :  { %439 = vmatpush.msrb.mxu0 %v395_v20  ;;  %564 = vmatpush.msra.mxu2 %v395_v20 }
  0xa2   :  { %v176_v25 = vadd.f32 %v175_v17, %v144_v22  ;;  %v400_v17 = vld [vmem:[%s1023_s4 + $0x68] sm:$0xff]  ;;  %v393_v22 = vld [vmem:[%s1023_s4 + $0x30] sm:$0xff] }
  0xa3   :  { %466 = vmatpush.msrb.mxu1 %v400_v17  ;;  %440 = vmatpush.msrb.mxu0 %v393_v22 }
  0xa4   :  { %v190_v26 = vmax.f32 %v176_v25, 0.0  ;;  %v392_v25 = vld [vmem:[%s1023_s4 + $0x28] sm:$0xff]  ;;  %565 = vmatpush.msra.mxu2 %v393_v22 }
  0xa5   :  { %v181_v35 = vpop.f32.mrf.mxu2  ;;  %467 = vmatpush.msrb.mxu1 %v398_v19 }
  0xa6   :  { %530 = vmatmul.msk.f32.vlgmr.msrb.gmra.mxu2 %vm235_vm2, %v190_v26  ;;  %v114_v29 = vpop.f32.mrf.mxu0  ;;  %v226_v39 = vrot.slane %v190_v26, 2  ;;  %v330_v2 = vrot.slane %v190_v26, 4 }
  0xa7   :  { %v146_v30 = vpop.f32.mrf.mxu1  ;;  %468 = vmatpush.msrb.mxu1 %v396_v21 }
  0xa8   :  { %v147_v32 = vadd.f32 %v146_v30, %v114_v29  ;;  %v387_v29 = vld [vmem:[%s1023_s4] sm:$0xff]  ;;  %v388_v30 = vld [vmem:[%s1023_s4 + $0x8] sm:$0xff] }
  0xa9   :  { %469 = vmatpush.msrb.mxu1 %v394_v23 }
  0xaa   :  { %v179_v34 = vadd.f32 %v178_v24, %v147_v32  ;;  %v391_v24 = vld [vmem:[%s1023_s4 + $0x20] sm:$0xff] }
  0xab   :  { %441 = vmatpush.msrb.mxu0 %v391_v24  ;;  %470 = vmatpush.msrb.mxu1 %v392_v25 }
  0xac   :  { %v191_v37 = vmax.f32 %v179_v34, 0.0  ;;  %566 = vmatpush.msra.mxu2 %v391_v24 }
  0xad   :  { %v184_v47 = vpop.f32.mrf.mxu2  ;;  %442 = vmatpush.msrb.mxu0 %v389_v27  ;;  %471 = vmatpush.msrb.mxu1 %v390_v28 }
  0xae   :  { %v227_v40 = vrot.slane %v191_v37, 2  ;;  %531 = vmatmul.msk.f32.gmra.mxu2 %vm235_vm2, %v191_v37  ;;  %v117_v41 = vpop.f32.mrf.mxu0  ;;  %v331_v1 = vrot.slane %v191_v37, 4 }
  0xaf   :  { %v149_v42 = vpop.f32.mrf.mxu1  ;;  %567 = vmatpush.msra.mxu2 %v389_v27  ;;  %443 = vmatpush.msrb.mxu0 %v387_v29 }
  0xb0   :  { %v150_v43 = vadd.f32 %v149_v42, %v117_v41  ;;  %v228_v44 = vsel %vm225_vm3, %v226_v39, %v227_v40  ;;  %v332_v3 = vsel %vm329_vm4, %v330_v2, %v331_v1  ;;  %472 = vmatpush.msrb.mxu1 %v388_v30 }
  0xb1   :  { %525 = vmatmul.msk.f32.vlgmr.msra.gmra.mxu3 %vm235_vm2, %v228_v44  ;;  %568 = vmatpush.msra.mxu2 %v387_v29 }
  0xb2   :  { %v182_v45 = vadd.f32 %v181_v35, %v150_v43  ;;  %569 = vmatpush.msra.mxu3 %v406_v11 }
  0xb4   :  { %v192_v46 = vmax.f32 %v182_v45, 0.0  ;;  %570 = vmatpush.msra.mxu3 %v404_v13 }
  0xb5   :  { %v187_v56 = vpop.f32.mrf.mxu2 }
  0xb6   :  { %v229_v48 = vrot.slane %v192_v46, 2  ;;  %532 = vmatmul.msk.f32.gmra.mxu2 %vm235_vm2, %v192_v46  ;;  %v120_v49 = vpop.f32.mrf.mxu0  ;;  %v333_v4 = vrot.slane %v192_v46, 4  ;;  %571 = vmatpush.msra.mxu3 %v402_v15  ;;  %v414_v15 = vld [vmem:[%s1024_s1 + $0x38] sm:$0xff] }
  0xb7   :  { %v152_v50 = vpop.f32.mrf.mxu1 }
  0xb8   :  { %v153_v51 = vadd.f32 %v152_v50, %v120_v49  ;;  %v230_v52 = vsel %vm225_vm3, %v227_v40, %v229_v48  ;;  %v334_v5 = vsel %vm329_vm4, %v331_v1, %v333_v4  ;;  %572 = vmatpush.msra.mxu3 %v400_v17 }
  0xb9   :  { %526 = vmatmul.msk.f32.gmra.mxu3 %vm235_vm2, %v230_v52 }
  0xba   :  { %v185_v53 = vadd.f32 %v184_v47, %v153_v51  ;;  %573 = vmatpush.msra.mxu3 %v398_v19 }
  0xbc   :  { %v193_v54 = vmax.f32 %v185_v53, 0.0  ;;  %574 = vmatpush.msra.mxu3 %v396_v21 }
  0xbe   :  { %v231_v55 = vrot.slane %v193_v54, 2  ;;  %533 = vmatmul.msk.f32.gmra.mxu2 %vm235_vm2, %v193_v54  ;;  %v123_v57 = vpop.f32.mrf.mxu0  ;;  %v335_v6 = vrot.slane %v193_v54, 4  ;;  %575 = vmatpush.msra.mxu3 %v394_v23  ;;  %v407_v54 = vld [vmem:[%s1024_s1] sm:$0xff] }
  0xbf   :  { %v155_v58 = vpop.f32.mrf.mxu1 }
  0xc0   :  { %v156_v59 = vadd.f32 %v155_v58, %v123_v57  ;;  %v232_v60 = vsel %vm225_vm3, %v229_v48, %v231_v55  ;;  %v336_v7 = vsel %vm329_vm4, %v333_v4, %v335_v6  ;;  %576 = vmatpush.msra.mxu3 %v392_v25 }
  0xc1   :  { %527 = vmatmul.msk.f32.gmra.mxu3 %vm235_vm2, %v232_v60 }
  0xc2   :  { %v188_v61 = vadd.f32 %v187_v56, %v156_v59  ;;  %577 = vmatpush.msra.mxu3 %v390_v28 }
  0xc4   :  { %v194_v62 = vmax.f32 %v188_v61, 0.0  ;;  %578 = vmatpush.msra.mxu3 %v388_v30 }
  0xc6   :  { %v233_v63 = vrot.slane %v194_v62, 2  ;;  %v337_v8 = vrot.slane %v194_v62, 4  ;;  %v409_v62 = vld [vmem:[%s1024_s1 + $0x10] sm:$0xff] }
  0xc8   :  { %v234_v0 = vsel %vm225_vm3, %v231_v55, %v233_v63  ;;  %v338_v9 = vsel %vm329_vm4, %v335_v6, %v337_v8  ;;  %v408_v55 = vld [vmem:[%s1024_s1 + $0x8] sm:$0xff]  ;;  %v410_v63 = vld [vmem:[%s1024_s1 + $0x18] sm:$0xff]  ;;  %v411_v6 = vld [vmem:[%s1024_s1 + $0x20] sm:$0xff] }
  0xc9   :  { %528 = vmatmul.msk.f32.gmra.mxu3 %vm235_vm2, %v234_v0 }
  0xd1   :  { %547 = vmatmul.msk.f32.vlgmr.msrb.gmra.mxu3 %vm235_vm2, %v332_v3 }
  0xd9   :  { %548 = vmatmul.msk.f32.gmra.mxu3 %vm235_vm2, %v334_v5 }
  0xe1   :  { %549 = vmatmul.msk.f32.gmra.mxu3 %vm235_vm2, %v336_v7  ;;  %v412_v7 = vld [vmem:[%s1024_s1 + $0x28] sm:$0xff] }
  0xe9   :  { %550 = vmatmul.msk.f32.gmra.mxu3 %vm235_vm2, %v338_v9 }
 0x129   :  { %v304_v33 = vpop.f32.mrf.mxu2 }
 0x131   :  { %v307_v38 = vpop.f32.mrf.mxu2 }
 0x134   :  { %v264_v26 = vpop.f32.mrf.mxu3 }
 0x135   :  { %v305_v35 = vadd.f32 %v304_v33, %v264_v26 }
 0x139   :  { %v310_v44 = vpop.f32.mrf.mxu2 }
 0x13c   :  { %v267_v31 = vpop.f32.mrf.mxu3 }
 0x13d   :  { %v308_v40 = vadd.f32 %v307_v38, %v267_v31 }
 0x141   :  { %v313_v49 = vpop.f32.mrf.mxu2 }
 0x144   :  { %v270_v32 = vpop.f32.mrf.mxu3 }
 0x145   :  { %v311_v45 = vadd.f32 %v310_v44, %v270_v32 }
 0x14c   :  { %v273_v34 = vpop.f32.mrf.mxu3 }
 0x14d   :  { %v314_v50 = vadd.f32 %v313_v49, %v273_v34 }
 0x154   :  { %v367_v36 = vpop.f32.mrf.mxu3 }
 0x155   :  { %v379_v37 = vadd.f32 %v367_v36, %v305_v35 }
 0x157   :  { %v383_v39 = vmax.f32 %v379_v37, 0.0 }
 0x159   :  { %551 = vmatmul.msk.f32.vlgmr.msrb.gmra.mxu0 %vm415_vm5, %v383_v39  ;;  %555 = vmatmul.msk.f32.vlgmr.msrb.gmra.mxu1 %vm415_vm5, %v383_v39 }
 0x15c   :  { %v370_v41 = vpop.f32.mrf.mxu3 }
 0x15d   :  { %v380_v42 = vadd.f32 %v370_v41, %v308_v40 }
 0x15f   :  { %v384_v43 = vmax.f32 %v380_v42, 0.0 }
 0x161   :  { %552 = vmatmul.msk.f32.gmra.mxu0 %vm415_vm5, %v384_v43  ;;  %556 = vmatmul.msk.f32.gmra.mxu1 %vm415_vm5, %v384_v43 }
 0x164   :  { %v373_v46 = vpop.f32.mrf.mxu3 }
 0x165   :  { %v381_v47 = vadd.f32 %v373_v46, %v311_v45 }
 0x167   :  { %v385_v48 = vmax.f32 %v381_v47, 0.0 }
 0x169   :  { %553 = vmatmul.msk.f32.gmra.mxu0 %vm415_vm5, %v385_v48  ;;  %557 = vmatmul.msk.f32.gmra.mxu1 %vm415_vm5, %v385_v48 }
 0x16c   :  { %v376_v51 = vpop.f32.mrf.mxu3 }
 0x16d   :  { %v382_v52 = vadd.f32 %v376_v51, %v314_v50 }
 0x16f   :  { %v386_v53 = vmax.f32 %v382_v52, 0.0 }
 0x171   :  { %554 = vmatmul.msk.f32.vlgmr.msra.gmra.mxu2 %vm415_vm5, %v386_v53  ;;  %558 = vmatmul.msk.f32.vlgmr.msra.gmra.mxu3 %vm415_vm5, %v386_v53 }
 0x1d6   :  { %v445_v56 = vpop.f32.mrf.mxu0  ;;  %v474_v57 = vpop.f32.mrf.mxu1 }
 0x1d7   :  { %v446_v58 = vadd.f32 %v445_v56, %v407_v54  ;;  %v475_v59 = vadd.f32 %v474_v57, %v408_v55 }
 0x1d9   :  { %v486_v60 = vmax.f32 %v446_v58, 0.0  ;;  %v487_v61 = vmax.f32 %v475_v59, 0.0 }
 0x1db   :  { %494 = vst [vmem:[%s1025_s5] sm:$0xff] %v486_v60 }
 0x1dc   :  { %495 = vst [vmem:[%s1025_s5 + $0x8] sm:$0xff] %v487_v61 }
 0x1de   :  { %v448_v0 = vpop.f32.mrf.mxu0  ;;  %v477_v1 = vpop.f32.mrf.mxu1 }
 0x1df   :  { %v449_v2 = vadd.f32 %v448_v0, %v409_v62  ;;  %v478_v3 = vadd.f32 %v477_v1, %v410_v63 }
 0x1e1   :  { %v488_v4 = vmax.f32 %v449_v2, 0.0  ;;  %v489_v5 = vmax.f32 %v478_v3, 0.0 }
 0x1e3   :  { %496 = vst [vmem:[%s1025_s5 + $0x10] sm:$0xff] %v488_v4 }
 0x1e4   :  { %497 = vst [vmem:[%s1025_s5 + $0x18] sm:$0xff] %v489_v5 }
 0x1e6   :  { %v451_v8 = vpop.f32.mrf.mxu0  ;;  %v480_v9 = vpop.f32.mrf.mxu1 }
 0x1e7   :  { %v452_v10 = vadd.f32 %v451_v8, %v411_v6  ;;  %v481_v11 = vadd.f32 %v480_v9, %v412_v7 }
 0x1e9   :  { %v490_v12 = vmax.f32 %v452_v10, 0.0  ;;  %v491_v13 = vmax.f32 %v481_v11, 0.0 }
 0x1eb   :  { %498 = vst [vmem:[%s1025_s5 + $0x20] sm:$0xff] %v490_v12 }
 0x1ec   :  { %499 = vst [vmem:[%s1025_s5 + $0x28] sm:$0xff] %v491_v13 }
 0x1f4   :  { %v454_v16 = vpop.f32.mrf.mxu2  ;;  %v483_v17 = vpop.f32.mrf.mxu3 }
 0x1f5   :  { %v455_v18 = vadd.f32 %v454_v16, %v413_v14  ;;  %v484_v19 = vadd.f32 %v483_v17, %v414_v15 }
 0x1f7   :  { %v492_v20 = vmax.f32 %v455_v18, 0.0  ;;  %v493_v21 = vmax.f32 %v484_v19, 0.0 }
 0x1f9   :  { %500 = vst [vmem:[%s1025_s5 + $0x30] sm:$0xff] %v492_v20 }
 0x1fa   :  { %501 = vst [vmem:[%s1025_s5 + $0x38] sm:$0xff] %v493_v21 }

</bundles_post_ra>
